<compile_context>
chip_gen: v5e
topology: v5e:2x2
jax: 0.10.0
libtpu: 0.0.40
codegen_flags: <defaults>
</compile_context>

<pallas_src>
import jax
import jax.numpy as jnp
from jax.experimental import pallas as pl
from jax.experimental.pallas import tpu as pltpu

LANE = 128       # vreg lane width
SUBLANE = 8      # f32 sublane count
NEG_MASK = -1e30  # finite "−inf" for padded logit lanes (exp underflows to 0)


def _round_up(x, m):
    return ((x + m - 1) // m) * m


def _pick_batch_tile(batch, in_p, hid_p, out_p, budget_bytes=24 * 1024 * 1024):
    """Largest batch tile (multiple of 8, <=1024) whose working set fits VMEM."""
    weight_bytes = (in_p * hid_p + hid_p * out_p) * 2 + (hid_p + out_p) * 4
    tb = min(_round_up(max(batch, 1), SUBLANE), 1024)
    while tb > SUBLANE:
        per_tile = (2 * tb * in_p * 2      # double-buffered bf16 x tiles
                    + 2 * tb * out_p * 4   # double-buffered f32 out tiles
                    + tb * hid_p * 4       # h intermediate
                    + tb * out_p * 4)      # logits intermediate
        if weight_bytes + per_tile <= budget_bytes:
            break
        tb = max(SUBLANE, _round_up(tb // 2, SUBLANE))
    return tb


def mlp_kernel(x_ref, w1_ref, b1_ref, w2_ref, b2_ref, o_ref):
    # fc1: (TB, INp) @ (INp, Hp) on the MXU — bf16 operands, f32 accumulation.
    h = jnp.dot(x_ref[...], w1_ref[...], preferred_element_type=jnp.float32)
    h = h + b1_ref[...]
    # dropout (eval) -> identity, ReLU in f32, dropout (eval) -> identity.
    h = jnp.maximum(h, 0.0)
    # fc2: (TB, Hp) @ (Hp, Np) — bf16 operands, f32 accumulation.
    logits = jnp.dot(h.astype(w2_ref.dtype), w2_ref[...],
                     preferred_element_type=jnp.float32)
    # b2 carries NEG_MASK in padded lanes, so they drop out of the softmax.
    logits = logits + b2_ref[...]
    # log_softmax along dim=1: exp/log -> EUP slot, row reduces -> XLU slot.
    m = jnp.max(logits, axis=-1, keepdims=True)
    z = logits - m
    lse = jnp.log(jnp.sum(jnp.exp(z), axis=-1, keepdims=True))
    o_ref[...] = (z - lse).astype(o_ref.dtype)


def simple_mlp_forward(x_nchw, w1, b1, w2, b2):
    """x_nchw: (B, C, H, W) f32. w1:(in,hidden) b1:(hidden,) w2:(hidden,out) b2:(out,).

    Returns (B, output_size) log-probabilities, matching
    log_softmax(fc2(relu(fc1(x.view(B, -1)))), dim=1) in eval mode.
    """
    B = x_nchw.shape[0]
    x2d = x_nchw.reshape(B, -1)                         # x.view(x.size(0), -1)
    input_size = x2d.shape[1]
    hidden_size = w1.shape[1]
    output_size = w2.shape[1]

    # Pad matmul dims to native tile sizes: lanes -> 128, batch -> batch tile.
    in_p = _round_up(input_size, LANE)
    hid_p = _round_up(hidden_size, LANE)
    out_p = _round_up(output_size, LANE)
    tb = _pick_batch_tile(B, in_p, hid_p, out_p)
    b_p = _round_up(max(B, tb), tb)
    grid = (b_p // tb,)

    # Zero padding is exact: ReLU(0 + 0) = 0 feeds zero rows of w2, so fc2 is
    # unchanged; padded logit lanes are masked via NEG_MASK baked into b2;
    # padded batch rows are sliced off below.
    x_p = jnp.zeros((b_p, in_p), jnp.bfloat16).at[:B, :input_size].set(
        x2d.astype(jnp.bfloat16))
    w1_p = jnp.zeros((in_p, hid_p), jnp.bfloat16).at[:input_size, :hidden_size].set(
        w1.astype(jnp.bfloat16))
    b1_p = jnp.zeros((1, hid_p), jnp.float32).at[0, :hidden_size].set(b1)
    w2_p = jnp.zeros((hid_p, out_p), jnp.bfloat16).at[:hidden_size, :output_size].set(
        w2.astype(jnp.bfloat16))
    b2_p = jnp.full((1, out_p), NEG_MASK, jnp.float32).at[0, :output_size].set(b2)

    cost = pl.CostEstimate(
        flops=2 * b_p * (in_p * hid_p + hid_p * out_p),
        transcendentals=b_p * out_p + b_p,
        bytes_accessed=(x_p.size * 2 + w1_p.size * 2 + w2_p.size * 2
                        + b1_p.size * 4 + b2_p.size * 4 + b_p * out_p * 4),
    )

    out_padded = pl.pallas_call(
        mlp_kernel,
        out_shape=jax.ShapeDtypeStruct((b_p, out_p), jnp.float32),
        grid_spec=pltpu.PrefetchScalarGridSpec(
            num_scalar_prefetch=0,
            grid=grid,
            in_specs=[
                pl.BlockSpec((tb, in_p), lambda i: (i, 0)),      # x: streamed tiles
                pl.BlockSpec((in_p, hid_p), lambda i: (0, 0)),   # w1: VMEM-resident
                pl.BlockSpec((1, hid_p), lambda i: (0, 0)),      # b1
                pl.BlockSpec((hid_p, out_p), lambda i: (0, 0)),  # w2
                pl.BlockSpec((1, out_p), lambda i: (0, 0)),      # b2 (with mask)
            ],
            out_specs=pl.BlockSpec((tb, out_p), lambda i: (i, 0)),
        ),
        compiler_params=pltpu.CompilerParams(
            dimension_semantics=("parallel",),   # megacore-shard batch on v7x
        ),
        cost_estimate=cost,
    )(x_p, w1_p, b1_p, w2_p, b2_p)

    return out_padded[:B, :output_size]


if __name__ == "__main__":
    # Small shapes implied by the forward: image-like input flattened.
    B, C, H, W = 2, 4, 16, 16
    input_size = C * H * W        # 1024
    hidden_size = 32
    output_size = 10

    key = jax.random.PRNGKey(0)
    kx, kw1, kb1, kw2, kb2 = jax.random.split(key, 5)

    x = jax.random.normal(kx, (B, C, H, W), dtype=jnp.float32)

    # Deterministic parameter init (uniform, roughly matching nn.Linear scale).
    lim1 = 1.0 / (input_size ** 0.5)
    w1 = jax.random.uniform(kw1, (input_size, hidden_size), jnp.float32, -lim1, lim1)
    b1 = jax.random.uniform(kb1, (hidden_size,), jnp.float32, -lim1, lim1)
    lim2 = 1.0 / (hidden_size ** 0.5)
    w2 = jax.random.uniform(kw2, (hidden_size, output_size), jnp.float32, -lim2, lim2)
    b2 = jax.random.uniform(kb2, (output_size,), jnp.float32, -lim2, lim2)

    out = simple_mlp_forward(x, w1, b1, w2, b2)
    jax.block_until_ready(out)

    # Sanity: correct shape and rows of exp(log_softmax) sum to ~1.
    assert out.shape == (B, output_size)
    row_sums = jnp.sum(jnp.exp(out), axis=1)
    assert jnp.allclose(row_sums, 1.0, atol=1e-5)

    # Cross-check against a pure-JAX (bf16-matched) reference.
    ref_h = jnp.maximum(
        x.reshape(B, -1).astype(jnp.bfloat16) @ w1.astype(jnp.bfloat16)
        + b1.astype(jnp.float32), 0.0)
    ref_logits = (ref_h.astype(jnp.bfloat16) @ w2.astype(jnp.bfloat16)
                  + b2.astype(jnp.float32))
    ref = jax.nn.log_softmax(ref_logits.astype(jnp.float32), axis=1)
    assert jnp.allclose(out, ref, atol=2e-2, rtol=2e-2)

    print("KERNEL_OK")
</pallas_src>

<mosaic_0001>
module attributes {stable_mosaic.version = 11 : i64} {
  func.func @mlp_kernel(%arg0: i32, %arg1: memref<8x1024xbf16, #tpu.memory_space<vmem>>, %arg2: memref<1024x128xbf16, #tpu.memory_space<vmem>>, %arg3: memref<1x128xf32, #tpu.memory_space<vmem>>, %arg4: memref<128x128xbf16, #tpu.memory_space<vmem>>, %arg5: memref<1x128xf32, #tpu.memory_space<vmem>>, %arg6: memref<8x128xf32, #tpu.memory_space<vmem>>) attributes {dimension_semantics = [#tpu.dimension_semantics<parallel>], iteration_bounds = array<i64: 1>, scalar_prefetch = 0 : i64, scratch_operands = 0 : i64, tpu.core_type = #tpu.core_type<tc>, window_params = [{transform_indices = @transform_0, window_bounds = array<i64: 8, 1024>}, {pipeline_mode = #tpu.pipeline_mode<synchronous>, transform_indices = @transform_1, window_bounds = array<i64: 1024, 128>}, {pipeline_mode = #tpu.pipeline_mode<synchronous>, transform_indices = @transform_2, window_bounds = array<i64: 1, 128>}, {pipeline_mode = #tpu.pipeline_mode<synchronous>, transform_indices = @transform_3, window_bounds = array<i64: 128, 128>}, {pipeline_mode = #tpu.pipeline_mode<synchronous>, transform_indices = @transform_4, window_bounds = array<i64: 1, 128>}, {transform_indices = @transform_5, window_bounds = array<i64: 8, 128>}]} {
    %c0 = arith.constant 0 : index
    %c0_0 = arith.constant 0 : index
    %0 = vector.load %arg1[%c0, %c0_0] : memref<8x1024xbf16, #tpu.memory_space<vmem>>, vector<8x1024xbf16>
    %c0_1 = arith.constant 0 : index
    %c0_2 = arith.constant 0 : index
    %1 = vector.load %arg2[%c0_1, %c0_2] : memref<1024x128xbf16, #tpu.memory_space<vmem>>, vector<1024x128xbf16>
    %cst = arith.constant dense<0.000000e+00> : vector<8x128xf32>
    %2 = tpu.matmul %0, %1, %cst {dimension_numbers = #tpu.dot_dimension_numbers<[1], [0], [0], [1], [0, 0, 1, 1], [], []>} : vector<8x1024xbf16>, vector<1024x128xbf16>, vector<8x128xf32> -> vector<8x128xf32>
    %c0_3 = arith.constant 0 : index
    %c0_4 = arith.constant 0 : index
    %3 = vector.load %arg3[%c0_3, %c0_4] : memref<1x128xf32, #tpu.memory_space<vmem>>, vector<1x128xf32>
    %4 = vector.broadcast %3 : vector<1x128xf32> to vector<8x128xf32>
    %5 = arith.addf %2, %4 : vector<8x128xf32>
    %cst_5 = arith.constant 0.000000e+00 : f32
    %6 = vector.broadcast %cst_5 : f32 to vector<8x128xf32>
    %7 = arith.maximumf %5, %6 : vector<8x128xf32>
    %8 = arith.truncf %7 : vector<8x128xf32> to vector<8x128xbf16>
    %c0_6 = arith.constant 0 : index
    %c0_7 = arith.constant 0 : index
    %9 = vector.load %arg4[%c0_6, %c0_7] : memref<128x128xbf16, #tpu.memory_space<vmem>>, vector<128x128xbf16>
    %cst_8 = arith.constant dense<0.000000e+00> : vector<8x128xf32>
    %10 = tpu.matmul %8, %9, %cst_8 {dimension_numbers = #tpu.dot_dimension_numbers<[1], [0], [0], [1], [0, 0, 1, 1], [], []>} : vector<8x128xbf16>, vector<128x128xbf16>, vector<8x128xf32> -> vector<8x128xf32>
    %c0_9 = arith.constant 0 : index
    %c0_10 = arith.constant 0 : index
    %11 = vector.load %arg5[%c0_9, %c0_10] : memref<1x128xf32, #tpu.memory_space<vmem>>, vector<1x128xf32>
    %12 = vector.broadcast %11 : vector<1x128xf32> to vector<8x128xf32>
    %13 = arith.addf %10, %12 : vector<8x128xf32>
    %cst_11 = arith.constant dense<0xFF800000> : vector<8xf32>
    %14 = vector.multi_reduction <maximumf>, %13, %cst_11 [1] : vector<8x128xf32> to vector<8xf32>
    %15 = vector.shape_cast %14 : vector<8xf32> to vector<8x1xf32>
    %16 = vector.broadcast %15 : vector<8x1xf32> to vector<8x128xf32>
    %17 = arith.subf %13, %16 : vector<8x128xf32>
    %18 = math.exp %17 : vector<8x128xf32>
    %cst_12 = arith.constant dense<0.000000e+00> : vector<8xf32>
    %19 = vector.multi_reduction <add>, %18, %cst_12 [1] : vector<8x128xf32> to vector<8xf32>
    %20 = vector.shape_cast %19 : vector<8xf32> to vector<8x1xf32>
    %21 = math.log %20 : vector<8x1xf32>
    %22 = vector.broadcast %21 : vector<8x1xf32> to vector<8x128xf32>
    %23 = arith.subf %17, %22 : vector<8x128xf32>
    %c0_13 = arith.constant 0 : index
    %c0_14 = arith.constant 0 : index
    %24 = vector.load %arg6[%c0_13, %c0_14] : memref<8x128xf32, #tpu.memory_space<vmem>>, vector<8x128xf32>
    tpu.vector_store %arg6[%c0_13, %c0_14], %23 {strides = array<i32>} : memref<8x128xf32, #tpu.memory_space<vmem>>, vector<8x128xf32>,
    return
  }
  func.func @transform_0(%arg0: i32) -> (i32, i32) {
    %c0_i32 = arith.constant 0 : i32
    %c0_i32_0 = arith.constant 0 : i32
    return %arg0, %c0_i32 : i32, i32
  }
  func.func @transform_1(%arg0: i32) -> (i32, i32) {
    %c0_i32 = arith.constant 0 : i32
    %c0_i32_0 = arith.constant 0 : i32
    %c0_i32_1 = arith.constant 0 : i32
    return %c0_i32, %c0_i32_0 : i32, i32
  }
  func.func @transform_2(%arg0: i32) -> (i32, i32) {
    %c0_i32 = arith.constant 0 : i32
    %c0_i32_0 = arith.constant 0 : i32
    %c0_i32_1 = arith.constant 0 : i32
    return %c0_i32, %c0_i32_0 : i32, i32
  }
  func.func @transform_3(%arg0: i32) -> (i32, i32) {
    %c0_i32 = arith.constant 0 : i32
    %c0_i32_0 = arith.constant 0 : i32
    %c0_i32_1 = arith.constant 0 : i32
    return %c0_i32, %c0_i32_0 : i32, i32
  }
  func.func @transform_4(%arg0: i32) -> (i32, i32) {
    %c0_i32 = arith.constant 0 : i32
    %c0_i32_0 = arith.constant 0 : i32
    %c0_i32_1 = arith.constant 0 : i32
    return %c0_i32, %c0_i32_0 : i32, i32
  }
  func.func @transform_5(%arg0: i32) -> (i32, i32) {
    %c0_i32 = arith.constant 0 : i32
    %c0_i32_0 = arith.constant 0 : i32
    return %arg0, %c0_i32 : i32, i32
  }
}

</mosaic_0001>

<bundles_post_ra>
// kernel: tpu_custom_call.1
= control target key start
LH: loop header
LB: loop body
LE: loop exit
PB: predicated region body
PF: predicated region fallthrough
CT: control target
= control target key end

     0   :  { %10 = vsyncpa [#allocation3], 0  ;;  %s1358_s0 = inlined_call_operand.hbm [shape: bf16[8,1024], index: 0, kind: input, shape index: {}]   ;;  %s1359_s1 = inlined_call_operand.hbm [shape: bf16[1024,128], index: 1, kind: input, shape index: {}]   ;;  %s1360_s2 = inlined_call_operand.vmem [shape: f32[1,128], index: 2, kind: input, shape index: {}]   ;;  %s1361_s3 = inlined_call_operand.hbm [shape: bf16[128,128], index: 3, kind: input, shape index: {}]   ;;  %s1362_s4 = inlined_call_operand.vmem [shape: f32[1,128], index: 4, kind: input, shape index: {}]   ;;  %s1363_s5 = inlined_call_operand.hbm [shape: f32[8,128], index: 5, kind: output, shape index: {}]  }
   0x1   :  { %11 = vsyncpa [#allocation6], 0  ;;  %s28_s20 = sshll.u32 %s1359_s1, 4  ;;  %s29_s20 = int_to_ptr.hbm [resolvable:$true] %s28_s20 }
   0x2   :  { %12 = vsyncpa [#allocation4], 0  ;;  %s1304_s21 = smov [#allocation5]   ;;  %s18_s25 = sshll.u32 %s1358_s0, 4  ;;  %s19_s25 = int_to_ptr.hbm [resolvable:$true] %s18_s25 }
   0x3   :  { %s30_s22 = sshll.u32 %s1304_s21, 4  ;;  %s1305_s26 = smov 64   ;;  %s31_s22 = int_to_ptr.vmem [resolvable:$true] %s30_s22 }
   0x4   :  { %s1306_s27 = smov 4   ;;  %s1307_s28 = smov [#allocation2]  }
   0x5   :  { %36 = dma.hbm_to_vmem [thread:$0]  %s29_s20, 8192, %s31_s22, [#allocation6], %s1305_s26, %s1305_s26, %s1306_s27  }
   0x6   :  { %s20_s29 = sshll.u32 %s1307_s28, 4  ;;  %s43_s7 = sshll.u32 %s1361_s3, 4  ;;  %s21_s29 = int_to_ptr.vmem [resolvable:$true] %s20_s29  ;;  %s44_s7 = int_to_ptr.hbm [resolvable:$true] %s43_s7 }
   0x7   :  { %23 = dma.hbm_to_vmem [thread:$0]  %s19_s25, 512, %s21_s29, [#allocation3]  }
   0x8   :  { %s1308_s1 = smov [#allocation7]  }
   0x9   :  { %s45_s8 = sshll.u32 %s1308_s1, 4  ;;  %s46_s8 = int_to_ptr.vmem [resolvable:$true] %s45_s8 }
   0xa   :  { %51 = dma.hbm_to_vmem [thread:$0]  %s44_s7, 1024, %s46_s8, [#allocation6], %s1305_s26, %s1305_s26, %s1306_s27  }
   0xb   :  { %1298 = dma.done.wait [#allocation3], 512  }
   0xc   :  { %1299 = vsyncadd [#allocation3], 4294966784 }
   0xd   :  { %1300 = dma.done.wait [#allocation6], 9216  }
   0xe   :  { %1301 = vsyncadd [#allocation6], 4294958080  ;;  %v1125_v0 = vld [vmem:[#allocation5 + $0x38] sm:$0xff]  ;;  %v1124_v4 = vld [vmem:[#allocation5 + $0x30] sm:$0xff]  ;;  %s1309_s10 = smov [#allocation8]   ;;  %s819_s14 = sshll.u32 %s1363_s5, 4  ;;  %s820_s14 = int_to_ptr.hbm [resolvable:$true] %s819_s14 }
   0xf   :  { %v1133_v1 = vld [vmem:[#allocation5 + $0x78] sm:$0xff]  ;;  %614 = vmatpush.bf16.msra.mxu0 %v1125_v0  ;;  %v1132_v5 = vld [vmem:[#allocation5 + $0x70] sm:$0xff]  ;;  %v1123_v8 = vld [vmem:[#allocation5 + $0x28] sm:$0xff]  ;;  %s817_s11 = sshll.u32 %s1309_s10, 4  ;;  %s818_s11 = int_to_ptr.vmem [resolvable:$true] %s817_s11 }
  0x10   :  { %v1141_v2 = vld [vmem:[#allocation5 + $0xb8] sm:$0xff]  ;;  %627 = vmatpush.bf16.msra.mxu1 %v1133_v1  ;;  %v1140_v6 = vld [vmem:[#allocation5 + $0xb0] sm:$0xff]  ;;  %v1131_v9 = vld [vmem:[#allocation5 + $0x68] sm:$0xff] }
  0x11   :  { %v1149_v3 = vld [vmem:[#allocation5 + $0xf8] sm:$0xff]  ;;  %640 = vmatpush.bf16.msra.mxu2 %v1141_v2  ;;  %v1148_v7 = vld [vmem:[#allocation5 + $0xf0] sm:$0xff]  ;;  %v1139_v10 = vld [vmem:[#allocation5 + $0xa8] sm:$0xff] }
  0x12   :  { %653 = vmatpush.bf16.msra.mxu3 %v1149_v3  ;;  %v1147_v11 = vld [vmem:[#allocation5 + $0xe8] sm:$0xff]  ;;  %v1122_v12 = vld [vmem:[#allocation5 + $0x20] sm:$0xff]  ;;  %v1121_v16 = vld [vmem:[#allocation5 + $0x18] sm:$0xff] }
  0x13   :  { %615 = vmatpush.bf16.msra.mxu0 %v1124_v4  ;;  %v1130_v13 = vld [vmem:[#allocation5 + $0x60] sm:$0xff]  ;;  %v1129_v17 = vld [vmem:[#allocation5 + $0x58] sm:$0xff]  ;;  %v1120_v20 = vld [vmem:[#allocation5 + $0x10] sm:$0xff] }
  0x14   :  { %628 = vmatpush.bf16.msra.mxu1 %v1132_v5  ;;  %v1138_v14 = vld [vmem:[#allocation5 + $0xa0] sm:$0xff]  ;;  %v1137_v18 = vld [vmem:[#allocation5 + $0x98] sm:$0xff]  ;;  %v1128_v21 = vld [vmem:[#allocation5 + $0x50] sm:$0xff] }
  0x15   :  { %641 = vmatpush.bf16.msra.mxu2 %v1140_v6  ;;  %v1146_v15 = vld [vmem:[#allocation5 + $0xe0] sm:$0xff]  ;;  %v1145_v19 = vld [vmem:[#allocation5 + $0xd8] sm:$0xff]  ;;  %v1136_v22 = vld [vmem:[#allocation5 + $0x90] sm:$0xff] }
  0x16   :  { %654 = vmatpush.bf16.msra.mxu3 %v1148_v7  ;;  %v1144_v23 = vld [vmem:[#allocation5 + $0xd0] sm:$0xff]  ;;  %v1119_v24 = vld [vmem:[#allocation5 + $0x8] sm:$0xff]  ;;  %v66_v29 = vld [vmem:[#allocation2] sm:$0xff] }
  0x17   :  { %616 = vmatpush.bf16.msra.mxu0 %v1123_v8  ;;  %v1127_v25 = vld [vmem:[#allocation5 + $0x48] sm:$0xff]  ;;  %v1118_v30 = vld [vmem:[#allocation5] sm:$0xff]  ;;  %v206_v33 = vunpack.c.l.b16 %v66_v29  ;;  %v207_v37 = vunpack.c.h.b16 %v66_v29  ;;  %v1157_v38 = vld [vmem:[#allocation5 + $0x138] sm:$0xff] }
  0x18   :  { %629 = vmatpush.bf16.msra.mxu1 %v1131_v9  ;;  %v1135_v26 = vld [vmem:[#allocation5 + $0x88] sm:$0xff]  ;;  %v1126_v31 = vld [vmem:[#allocation5 + $0x40] sm:$0xff]  ;;  %v1165_v39 = vld [vmem:[#allocation5 + $0x178] sm:$0xff] }
  0x19   :  { %642 = vmatpush.bf16.msra.mxu2 %v1139_v10  ;;  %v1143_v27 = vld [vmem:[#allocation5 + $0xc8] sm:$0xff]  ;;  %v1134_v34 = vld [vmem:[#allocation5 + $0x80] sm:$0xff]  ;;  %v1173_v40 = vld [vmem:[#allocation5 + $0x1b8] sm:$0xff]  ;;  %v214_v43 = vpack.c.b16 %v206_v33, %v206_v33  ;;  %v215_v45 = vpack.c.b16 %v207_v37, %v207_v37 }
  0x1a   :  { %655 = vmatpush.bf16.msra.mxu3 %v1147_v11  ;;  %v67_v28 = vld [vmem:[#allocation2 + $0x8] sm:$0xff]  ;;  %v1142_v35 = vld [vmem:[#allocation5 + $0xc0] sm:$0xff]  ;;  %v1181_v41 = vld [vmem:[#allocation5 + $0x1f8] sm:$0xff] }
  0x1b   :  { %617 = vmatpush.bf16.msra.mxu0 %v1122_v12  ;;  %v208_v32 = vunpack.c.l.b16 %v67_v28  ;;  %v209_v36 = vunpack.c.h.b16 %v67_v28  ;;  %v1156_v46 = vld [vmem:[#allocation5 + $0x130] sm:$0xff]  ;;  %v1155_v50 = vld [vmem:[#allocation5 + $0x128] sm:$0xff]  ;;  %v1154_v54 = vld [vmem:[#allocation5 + $0x120] sm:$0xff] }
  0x1c   :  { %630 = vmatpush.bf16.msra.mxu1 %v1130_v13  ;;  %v1164_v47 = vld [vmem:[#allocation5 + $0x170] sm:$0xff]  ;;  %v1163_v51 = vld [vmem:[#allocation5 + $0x168] sm:$0xff]  ;;  %v1162_v55 = vld [vmem:[#allocation5 + $0x160] sm:$0xff] }
  0x1d   :  { %643 = vmatpush.bf16.msra.mxu2 %v1138_v14  ;;  %v216_v42 = vpack.c.b16 %v208_v32, %v208_v32  ;;  %v217_v44 = vpack.c.b16 %v209_v36, %v209_v36  ;;  %v1172_v48 = vld [vmem:[#allocation5 + $0x1b0] sm:$0xff]  ;;  %v1171_v52 = vld [vmem:[#allocation5 + $0x1a8] sm:$0xff]  ;;  %v1170_v56 = vld [vmem:[#allocation5 + $0x1a0] sm:$0xff] }
  0x1e   :  { %656 = vmatpush.bf16.msra.mxu3 %v1146_v15  ;;  %v1180_v49 = vld [vmem:[#allocation5 + $0x1f0] sm:$0xff]  ;;  %v1179_v53 = vld [vmem:[#allocation5 + $0x1e8] sm:$0xff]  ;;  %v1178_v57 = vld [vmem:[#allocation5 + $0x1e0] sm:$0xff] }
  0x1f   :  { %618 = vmatpush.bf16.msra.mxu0 %v1121_v16  ;;  %v1153_v58 = vld [vmem:[#allocation5 + $0x118] sm:$0xff]  ;;  %v1152_v62 = vld [vmem:[#allocation5 + $0x110] sm:$0xff]  ;;  %v1151_v2 = vld [vmem:[#allocation5 + $0x108] sm:$0xff] }
  0x20   :  { %631 = vmatpush.bf16.msra.mxu1 %v1129_v17  ;;  %v1161_v59 = vld [vmem:[#allocation5 + $0x158] sm:$0xff]  ;;  %v1160_v63 = vld [vmem:[#allocation5 + $0x150] sm:$0xff]  ;;  %v1159_v3 = vld [vmem:[#allocation5 + $0x148] sm:$0xff] }
  0x21   :  { %644 = vmatpush.bf16.msra.mxu2 %v1137_v18  ;;  %v1169_v60 = vld [vmem:[#allocation5 + $0x198] sm:$0xff]  ;;  %v1168_v0 = vld [vmem:[#allocation5 + $0x190] sm:$0xff]  ;;  %v1167_v5 = vld [vmem:[#allocation5 + $0x188] sm:$0xff] }
  0x22   :  { %657 = vmatpush.bf16.msra.mxu3 %v1145_v19  ;;  %v1177_v61 = vld [vmem:[#allocation5 + $0x1d8] sm:$0xff]  ;;  %v1176_v1 = vld [vmem:[#allocation5 + $0x1d0] sm:$0xff]  ;;  %v1175_v6 = vld [vmem:[#allocation5 + $0x1c8] sm:$0xff] }
  0x23   :  { %619 = vmatpush.bf16.msra.mxu0 %v1120_v20  ;;  %v68_v4 = vld [vmem:[#allocation2 + $0x10] sm:$0xff]  ;;  %v69_v7 = vld [vmem:[#allocation2 + $0x18] sm:$0xff]  ;;  %v1150_v10 = vld [vmem:[#allocation5 + $0x100] sm:$0xff] }
  0x24   :  { %632 = vmatpush.bf16.msra.mxu1 %v1128_v21  ;;  %v210_v8 = vunpack.c.l.b16 %v68_v4  ;;  %v211_v9 = vunpack.c.h.b16 %v68_v4  ;;  %v1158_v11 = vld [vmem:[#allocation5 + $0x140] sm:$0xff]  ;;  %v212_v12 = vunpack.c.l.b16 %v69_v7  ;;  %v213_v13 = vunpack.c.h.b16 %v69_v7  ;;  %v1189_v20 = vld [vmem:[#allocation7 + $0x38] sm:$0xff]  ;;  %v1188_v21 = vld [vmem:[#allocation7 + $0x30] sm:$0xff] }
  0x25   :  { %645 = vmatpush.bf16.msra.mxu2 %v1136_v22  ;;  %v1166_v14 = vld [vmem:[#allocation5 + $0x180] sm:$0xff]  ;;  %v1187_v22 = vld [vmem:[#allocation7 + $0x28] sm:$0xff] }
  0x26   :  { %658 = vmatpush.bf16.msra.mxu3 %v1144_v23  ;;  %v1174_v15 = vld [vmem:[#allocation5 + $0x1c0] sm:$0xff]  ;;  %v218_v16 = vpack.c.b16 %v210_v8, %v210_v8  ;;  %v219_v17 = vpack.c.b16 %v211_v9, %v211_v9  ;;  %v220_v18 = vpack.c.b16 %v212_v12, %v212_v12  ;;  %v221_v19 = vpack.c.b16 %v213_v13, %v213_v13  ;;  %v1183_v28 = vld [vmem:[#allocation7 + $0x8] sm:$0xff] }
  0x27   :  { %620 = vmatpush.bf16.msra.mxu0 %v1119_v24  ;;  %v1186_v23 = vld [vmem:[#allocation7 + $0x20] sm:$0xff]  ;;  %v1185_v24 = vld [vmem:[#allocation7 + $0x18] sm:$0xff] }
  0x28   :  { %633 = vmatpush.bf16.msra.mxu1 %v1127_v25  ;;  %v1182_v32 = vld [vmem:[#allocation7] sm:$0xff] }
  0x29   :  { %646 = vmatpush.bf16.msra.mxu2 %v1135_v26  ;;  %v1184_v26 = vld [vmem:[#allocation7 + $0x10] sm:$0xff] }
  0x2a   :  { %659 = vmatpush.bf16.msra.mxu3 %v1143_v27 }
  0x2b   :  { %621 = vmatpush.bf16.msra.mxu0 %v1118_v30 }
  0x2c   :  { %634 = vmatpush.bf16.msra.mxu1 %v1126_v31 }
  0x2d   :  { %647 = vmatpush.bf16.msra.mxu2 %v1134_v34  ;;  %v1196_v34 = vld [vmem:[%s1360_s2] ss:$0 sm:$0xff] }
  0x2e   :  { %660 = vmatpush.bf16.msra.mxu3 %v1142_v35  ;;  %622 = vmatmul.bf16.vlgmr.msra.gmra.mxu0 %v214_v43 }
  0x2f   :  { %666 = vmatpush.bf16.msrb.mxu0 %v1157_v38  ;;  %635 = vmatmul.bf16.vlgmr.msra.gmra.mxu1 %v215_v45 }
  0x30   :  { %679 = vmatpush.bf16.msrb.mxu1 %v1165_v39  ;;  %648 = vmatmul.bf16.vlgmr.msra.gmra.mxu2 %v216_v42 }
  0x31   :  { %692 = vmatpush.bf16.msrb.mxu2 %v1173_v40  ;;  %661 = vmatmul.bf16.vlgmr.msra.gmra.mxu3 %v217_v44 }
  0x32   :  { %705 = vmatpush.bf16.msrb.mxu3 %v1181_v41 }
  0x33   :  { %667 = vmatpush.bf16.msrb.mxu0 %v1156_v46 }
  0x34   :  { %680 = vmatpush.bf16.msrb.mxu1 %v1164_v47 }
  0x35   :  { %693 = vmatpush.bf16.msrb.mxu2 %v1172_v48 }
  0x36   :  { %706 = vmatpush.bf16.msrb.mxu3 %v1180_v49 }
  0x37   :  { %668 = vmatpush.bf16.msrb.mxu0 %v1155_v50 }
  0x38   :  { %681 = vmatpush.bf16.msrb.mxu1 %v1163_v51 }
  0x39   :  { %694 = vmatpush.bf16.msrb.mxu2 %v1171_v52 }
  0x3a   :  { %707 = vmatpush.bf16.msrb.mxu3 %v1179_v53 }
  0x3b   :  { %669 = vmatpush.bf16.msrb.mxu0 %v1154_v54 }
  0x3c   :  { %682 = vmatpush.bf16.msrb.mxu1 %v1162_v55  ;;  %v1197_v55 = vld [vmem:[%s1362_s4] ss:$0 sm:$0xff] }
  0x3d   :  { %695 = vmatpush.bf16.msrb.mxu2 %v1170_v56 }
  0x3e   :  { %708 = vmatpush.bf16.msrb.mxu3 %v1178_v57 }
  0x3f   :  { %670 = vmatpush.bf16.msrb.mxu0 %v1153_v58 }
  0x40   :  { %683 = vmatpush.bf16.msrb.mxu1 %v1161_v59 }
  0x41   :  { %696 = vmatpush.bf16.msrb.mxu2 %v1169_v60 }
  0x42   :  { %709 = vmatpush.bf16.msrb.mxu3 %v1177_v61 }
  0x43   :  { %671 = vmatpush.bf16.msrb.mxu0 %v1152_v62 }
  0x44   :  { %684 = vmatpush.bf16.msrb.mxu1 %v1160_v63 }
  0x45   :  { %697 = vmatpush.bf16.msrb.mxu2 %v1168_v0 }
  0x46   :  { %710 = vmatpush.bf16.msrb.mxu3 %v1176_v1 }
  0x47   :  { %672 = vmatpush.bf16.msrb.mxu0 %v1151_v2 }
  0x48   :  { %685 = vmatpush.bf16.msrb.mxu1 %v1159_v3 }
  0x49   :  { %698 = vmatpush.bf16.msrb.mxu2 %v1167_v5 }
  0x4a   :  { %711 = vmatpush.bf16.msrb.mxu3 %v1175_v6 }
  0x4b   :  { %673 = vmatpush.bf16.msrb.mxu0 %v1150_v10 }
  0x4c   :  { %686 = vmatpush.bf16.msrb.mxu1 %v1158_v11 }
  0x4d   :  { %699 = vmatpush.bf16.msrb.mxu2 %v1166_v14 }
  0x4e   :  { %712 = vmatpush.bf16.msrb.mxu3 %v1174_v15  ;;  %674 = vmatmul.bf16.vlgmr.msrb.gmra.mxu0 %v218_v16 }
  0x4f   :  { %687 = vmatmul.bf16.vlgmr.msrb.gmra.mxu1 %v219_v17  ;;  %788 = vmatpush.bf16.msra.mxu0 %v1189_v20 }
  0x50   :  { %700 = vmatmul.bf16.vlgmr.msrb.gmra.mxu2 %v220_v18 }
  0x51   :  { %713 = vmatmul.bf16.vlgmr.msrb.gmra.mxu3 %v221_v19 }
  0x53   :  { %789 = vmatpush.bf16.msra.mxu0 %v1188_v21 }
  0x57   :  { %790 = vmatpush.bf16.msra.mxu0 %v1187_v22 }
  0x5b   :  { %791 = vmatpush.bf16.msra.mxu0 %v1186_v23 }
  0x5f   :  { %792 = vmatpush.bf16.msra.mxu0 %v1185_v24 }
  0x63   :  { %793 = vmatpush.bf16.msra.mxu0 %v1184_v26 }
  0x67   :  { %794 = vmatpush.bf16.msra.mxu0 %v1183_v28 }
  0x6b   :  { %795 = vmatpush.bf16.msra.mxu0 %v1182_v32 }
  0xab   :  { %v623_v25 = vpop.f32.mrf.mxu0 }
  0xac   :  { %v636_v27 = vpop.f32.mrf.mxu1  ;;  %v624_v37 = vadd.f32 %v1196_v34, %v623_v25 }
  0xae   :  { %v637_v38 = vadd.f32 %v636_v27, %v624_v37 }
  0xb3   :  { %v649_v29 = vpop.f32.mrf.mxu2  ;;  %v625_v31 = vpop.f32.mrf.mxu0 }
  0xb4   :  { %v662_v30 = vpop.f32.mrf.mxu3  ;;  %v638_v33 = vpop.f32.mrf.mxu1  ;;  %v650_v39 = vadd.f32 %v649_v29, %v637_v38 }
  0xb6   :  { %v663_v40 = vadd.f32 %v662_v30, %v650_v39 }
  0xbb   :  { %v651_v35 = vpop.f32.mrf.mxu2 }
  0xbc   :  { %v664_v36 = vpop.f32.mrf.mxu3 }
  0xcb   :  { %v675_v41 = vpop.f32.mrf.mxu0 }
  0xcc   :  { %v688_v42 = vpop.f32.mrf.mxu1  ;;  %v676_v43 = vadd.f32 %v675_v41, %v663_v40 }
  0xce   :  { %v689_v44 = vadd.f32 %v688_v42, %v676_v43 }
  0xd3   :  { %v701_v45 = vpop.f32.mrf.mxu2  ;;  %v677_v48 = vpop.f32.mrf.mxu0 }
  0xd4   :  { %v714_v46 = vpop.f32.mrf.mxu3  ;;  %v702_v47 = vadd.f32 %v701_v45, %v689_v44  ;;  %v690_v49 = vpop.f32.mrf.mxu1 }
  0xd6   :  { %v715_v50 = vadd.f32 %v714_v46, %v702_v47 }
  0xd8   :  { %v718_v51 = vmax.f32 %v715_v50, 0.0 }
  0xda   :  { %v719_v52 = vpack.c.bf16 %v718_v51, %v718_v51 }
  0xdb   :  { %v703_v53 = vpop.f32.mrf.mxu2 }
  0xdc   :  { %v716_v54 = vpop.f32.mrf.mxu3  ;;  %796 = vmatmul.bf16.vlgmr.msra.gmra.mxu0 %v719_v52 }
 0x159   :  { %v797_v56 = vpop.f32.mrf.mxu0 }
 0x15a   :  { %v798_v57 = vadd.f32 %v1197_v55, %v797_v56 }
 0x15c   :  { %801 = vmax.xlane.f32.xlu0 %v798_v57 }
 0x161   :  { %v799_v58 = vpop.f32.mrf.mxu0 }
 0x1cf   :  { %v802_v59 = vpop.xlane.xlu0 %801 }
 0x1d0   :  { %v803_v60 = vsub.f32 %v798_v57, %v802_v59 }
 0x1d2   :  { %v804_v61 = vmul.f32 1.442695, %v803_v60 }
 0x1d4   :  { %1198 = vpow2.f32 %v804_v61 }
 0x1da   :  { %v1199_v62 = vpop.eup %1198 }
 0x1db   :  { %806 = vadd.xlane.f32.xlu0 %v1199_v62 }
 0x24e   :  { %v807_v63 = vpop.xlane.xlu0 %806 }
 0x24f   :  { %1200 = vlog2.f32 %v807_v63 }
 0x255   :  { %v1201_v0 = vpop.eup %1200 }
 0x256   :  { %v809_v1 = vmul.f32 0.6931472, %v1201_v0 }
 0x258   :  { %v810_v2 = vsub.f32 %v803_v60, %v809_v1 }
 0x25a   :  { %811 = vst [vmem:[#allocation8] sm:$0xff] %v810_v2 }
 0x25b   :  { %822 = dma.vmem_to_hbm [thread:$0]  %s818_s11, 128, %s820_s14, [#allocation4]  }
 0x25c   :  { %1302 = dma.done.wait [#allocation4], 128  }
 0x25d   :  { %1303 = vsyncadd [#allocation4], 4294967168 }
 0x25e   :  { %827 = vsyncpa [#allocation3], 1 }
 0x25f   :  { %828 = vsyncpa [#allocation6], 1 }
 0x260   :  { %829 = vsyncpa [#allocation4], 1 }

</bundles_post_ra>
